<compile_context>
chip_gen: v6e
topology: v6e:2x2x1
jax: 0.10.0
libtpu: 0.0.40
codegen_flags: <defaults>
</compile_context>

<pallas_src>
import jax
import jax.numpy as jnp
from jax import lax
from jax.experimental import pallas as pl
from jax.experimental.pallas import tpu as pltpu


# --------------------------------------------------------------------------- #
# Kernels
# --------------------------------------------------------------------------- #
def _cls_head_kernel(x_ref, w1_ref, b1_ref, w2_ref, b2_ref, o_ref):
    """Weight-resident variant.

    x_ref:  [TB, D]    CLS activations (seq dim squeezed by BlockSpec or wrapper)
    w1_ref: [D,  Dp]   dense weight, [in, out], hidden dim lane-padded
    b1_ref: [1,  Dp]   dense bias, f32
    w2_ref: [Dp, LP]   out_proj weight, [in, out], label dim lane-padded
    b2_ref: [1,  LP]   out_proj bias, f32
    o_ref:  [TB, LP]
    """
    x = x_ref[...]
    # dense: x @ W1 — weights already [K, N]; canonical MXU feed, no transpose.
    h = lax.dot_general(
        x, w1_ref[...],
        dimension_numbers=(((1,), (0,)), ((), ())),
        preferred_element_type=jnp.float32)
    h = h + b1_ref[...]                               # bias pre-cast to f32
    if jnp.dtype(w2_ref.dtype) == jnp.dtype(jnp.bfloat16):
        # bf16 EUP (v6e/v7x); the downcast feeds the second MXU op anyway.
        h = jnp.tanh(h.astype(jnp.bfloat16))
    else:
        h = jnp.tanh(h).astype(w2_ref.dtype)
    # out_proj: h @ W2, f32 accumulation.
    y = lax.dot_general(
        h, w2_ref[...],
        dimension_numbers=(((1,), (0,)), ((), ())),
        preferred_element_type=jnp.float32)
    o_ref[...] = (y + b2_ref[...]).astype(o_ref.dtype)


def _cls_head_kernel_ktiled(x_ref, w1_ref, b1_ref, w2_ref, b2_ref, o_ref, acc_ref):
    """Hidden-dim (K) tiled variant for heads whose weights don't fit VMEM.

    Grid = (batch tiles, hidden tiles).  Per hidden tile k:
        h_k   = tanh(x @ W1[:, k] + b1[k])        [TB, tn]
        acc  += h_k @ W2[k, :]                    [TB, LP]
    Exact because tanh is elementwise over the hidden dim.
    """
    k = pl.program_id(1)

    @pl.when(k == 0)
    def _init():
        acc_ref[...] = jnp.zeros_like(acc_ref)

    h = lax.dot_general(
        x_ref[...], w1_ref[...],
        dimension_numbers=(((1,), (0,)), ((), ())),
        preferred_element_type=jnp.float32)
    h = h + b1_ref[...]
    if jnp.dtype(w2_ref.dtype) == jnp.dtype(jnp.bfloat16):
        h = jnp.tanh(h.astype(jnp.bfloat16))
    else:
        h = jnp.tanh(h).astype(w2_ref.dtype)
    acc_ref[...] += lax.dot_general(
        h, w2_ref[...],
        dimension_numbers=(((1,), (0,)), ((), ())),
        preferred_element_type=jnp.float32)

    @pl.when(k == pl.num_programs(1) - 1)
    def _finalize():
        o_ref[...] = (acc_ref[...] + b2_ref[...]).astype(o_ref.dtype)


# --------------------------------------------------------------------------- #
# Wrapper
# --------------------------------------------------------------------------- #
def _vmem_capacity_bytes():
    # Per-TensorCore VMEM.  Fall back to the v7x floor (64 MiB) if the query is
    # unavailable — safe on every current chip.
    try:
        return int(pltpu.get_tpu_info().vmem_capacity_bytes)
    except Exception:
        return 64 << 20


def prepare_classification_head_params(dense_w, dense_b, out_w, out_b):
    """One-time (init-time) parameter prep — hoisted out of the forward pass:
    transpose PyTorch [out, in] weights to [in, out], pad hidden / label dims to
    the 128-lane grid, pre-cast biases to f32.  Zero padding is semantics-
    preserving (padded hidden cols give tanh(0)=0 against zero W2 rows)."""
    D = dense_w.shape[1]
    L = out_w.shape[0]
    Dp = pl.cdiv(D, 128) * 128
    LP = pl.cdiv(L, 128) * 128
    w1t = jnp.pad(jnp.transpose(dense_w), ((0, 0), (0, Dp - D)))      # [D, Dp]
    b1 = jnp.pad(dense_b.astype(jnp.float32), (0, Dp - D)).reshape(1, Dp)
    w2t = jnp.pad(jnp.transpose(out_w), ((0, Dp - D), (0, LP - L)))   # [Dp, LP]
    b2 = jnp.pad(out_b.astype(jnp.float32), (0, LP - L)).reshape(1, LP)
    return {"w1t": w1t, "b1": b1, "w2t": w2t, "b2": b2,
            "d_model": D, "num_labels": L}


def classification_head_apply(features, params, *, tb=512, out_dtype=None,
                              hidden_tile=None, core_parallel=False):
    """features: [B, S, D]; params from prepare_classification_head_params.
    Returns logits [B, num_labels] (dropout is identity in eval mode)."""
    B, S, D = features.shape
    assert D == params["d_model"], "feature dim does not match prepared params"
    L = params["num_labels"]
    w1t, b1, w2t, b2 = params["w1t"], params["b1"], params["w2t"], params["b2"]
    Dp, LP = w1t.shape[1], w2t.shape[1]
    out_dtype = features.dtype if out_dtype is None else out_dtype

    isz_x = jnp.dtype(features.dtype).itemsize
    isz_w = jnp.dtype(w1t.dtype).itemsize
    isz_o = jnp.dtype(out_dtype).itemsize

    capacity = _vmem_capacity_bytes()
    budget = int(capacity * 0.80)       # headroom: ~51 MiB on v7x, ~102 MiB on v5e/v6e
    headroom = 2 << 20                  # compiler-internal scratch

    # v7x: pass core_parallel=True to actually shard the batch axis across the
    # 2 TensorCores (plain "parallel" has no codegen effect there).
    batch_sem = pltpu.CORE_PARALLEL if core_parallel else "parallel"

    # Tiny d_model: the squeezed-seq BlockSpec would issue one short strided DMA
    # run per batch row; take the contiguous CLS slab in the wrapper instead.
    squeeze_in_spec = (D * isz_x) >= 512
    x_in = features if squeeze_in_spec else features[:, 0, :]

    def make_x_spec(TB, n_grid):
        if squeeze_in_spec:
            if n_grid == 1:
                return pl.BlockSpec((TB, pl.Squeezed(), D), lambda i: (i, 0, 0))
            return pl.BlockSpec((TB, pl.Squeezed(), D), lambda i, k: (i, 0, 0))
        if n_grid == 1:
            return pl.BlockSpec((TB, D), lambda i: (i, 0))
        return pl.BlockSpec((TB, D), lambda i, k: (i, 0))

    # Resident (single-buffered) parameter footprint.
    resident_w = (w1t.size + w2t.size) * isz_w + (b1.size + b2.size) * 4

    def blocks_resident(TB):
        # double-buffered x & out blocks + f32 h, its downcast copy, f32 y.
        return (2 * TB * D * isz_x + 2 * TB * LP * isz_o
                + TB * Dp * 4 + TB * Dp * isz_w + TB * LP * 4)

    def pick_tb(fits):
        if B < 8:
            return B
        cands = [c for c in (1024, 768, 512, 384, 256, 128, 64, 32, 16, 8)
                 if c <= min(B, tb)] or [8]
        for c in cands:
            if fits(c):
                return c
        return cands[-1]

    min_tb = B if B < 8 else 8
    force_ktiled = hidden_tile is not None
    use_resident = (not force_ktiled) and (
        resident_w + blocks_resident(min_tb) + headroom <= budget)

    if use_resident:
        TB = pick_tb(lambda c: resident_w + blocks_resident(c) + headroom <= budget)
        grid = (pl.cdiv(B, TB),)
        const = lambda i: (0, 0)
        in_specs = [
            make_x_spec(TB, 1),
            # Resident params: constant index_map + single buffering (1x VMEM).
            pl.BlockSpec((D, Dp), const, pipeline_mode=pl.Buffered(buffer_count=1)),
            pl.BlockSpec((1, Dp), const, pipeline_mode=pl.Buffered(buffer_count=1)),
            pl.BlockSpec((Dp, LP), const, pipeline_mode=pl.Buffered(buffer_count=1)),
            pl.BlockSpec((1, LP), const, pipeline_mode=pl.Buffered(buffer_count=1)),
        ]
        out_specs = pl.BlockSpec((TB, LP), lambda i: (i, 0))
        scratch_shapes = []
        kernel = _cls_head_kernel
        dim_sem = (batch_sem,)
        need = resident_w + blocks_resident(TB) + 2 * headroom
    else:
        # K-tiled over the hidden dim (huge d_model; keeps big heads on-chip).
        if force_ktiled:
            tn = int(hidden_tile)
            assert tn % 128 == 0 and Dp % tn == 0, \
                "hidden_tile must divide padded d_model and be a multiple of 128"
        else:
            tn = next(c for c in (512, 384, 256, 128) if Dp % c == 0)

        def blocks_ktiled(TB):
            return (2 * TB * D * isz_x + 2 * TB * LP * isz_o + TB * LP * 4
                    + 2 * (D * tn * isz_w + tn * 4 + tn * LP * isz_w)
                    + b2.size * 4 + TB * tn * 4 + TB * tn * isz_w)

        TB = pick_tb(lambda c: blocks_ktiled(c) + headroom <= budget)
        grid = (pl.cdiv(B, TB), Dp // tn)
        in_specs = [
            make_x_spec(TB, 2),
            pl.BlockSpec((D, tn), lambda i, k: (0, k)),
            pl.BlockSpec((1, tn), lambda i, k: (0, k)),
            pl.BlockSpec((tn, LP), lambda i, k: (k, 0)),
            pl.BlockSpec((1, LP), lambda i, k: (0, 0),
                         pipeline_mode=pl.Buffered(buffer_count=1)),
        ]
        out_specs = pl.BlockSpec((TB, LP), lambda i, k: (i, 0))
        scratch_shapes = [pltpu.VMEM((TB, LP), jnp.float32)]
        kernel = _cls_head_kernel_ktiled
        dim_sem = (batch_sem, "arbitrary")
        need = blocks_ktiled(TB) + 2 * headroom

    vmem_limit = int(max(16 << 20, min(budget, need)))

    out_padded = pl.pallas_call(
        kernel,
        out_shape=jax.ShapeDtypeStruct((B, LP), out_dtype),
        grid_spec=pltpu.PrefetchScalarGridSpec(
            num_scalar_prefetch=0,
            grid=grid,
            in_specs=in_specs,
            out_specs=out_specs,
            scratch_shapes=scratch_shapes),
        compiler_params=pltpu.CompilerParams(
            dimension_semantics=dim_sem,
            vmem_limit_bytes=vmem_limit),
    )(x_in, w1t, b1, w2t, b2)

    return out_padded[:, :L]


def classification_head(features, dense_w, dense_b, out_w, out_b, **kwargs):
    """Drop-in wrapper taking PyTorch-layout weights ([out, in]).  In real use,
    hoist prepare_classification_head_params to parameter-init time."""
    params = prepare_classification_head_params(dense_w, dense_b, out_w, out_b)
    return classification_head_apply(features, params, **kwargs)


# --------------------------------------------------------------------------- #
# Self-test
# --------------------------------------------------------------------------- #
if __name__ == "__main__":
    # --- Test 1: config-implied small shapes (weight-resident path) ----------
    B, S, D, L = 2, 8, 32, 4
    key = jax.random.PRNGKey(0)
    k_feat, k_w1, k_b1, k_w2, k_b2 = jax.random.split(key, 5)

    features = jax.random.normal(k_feat, (B, S, D), dtype=jnp.float32)
    dense_w = jax.random.normal(k_w1, (D, D), dtype=jnp.float32) * 0.05   # [out, in]
    dense_b = jax.random.normal(k_b1, (D,), dtype=jnp.float32) * 0.01
    out_w = jax.random.normal(k_w2, (L, D), dtype=jnp.float32) * 0.05     # [out, in]
    out_b = jax.random.normal(k_b2, (L,), dtype=jnp.float32) * 0.01

    params = prepare_classification_head_params(dense_w, dense_b, out_w, out_b)
    logits = jax.block_until_ready(classification_head_apply(features, params))

    x = features[:, 0, :]
    ref = jnp.tanh(x @ dense_w.T + dense_b) @ out_w.T + out_b
    assert logits.shape == (B, L)
    assert jnp.allclose(logits, ref, atol=1e-4, rtol=1e-4), \
        float(jnp.max(jnp.abs(logits - ref)))

    # --- Test 2: exercise the hidden-dim K-tiled path (2 accumulation steps) -
    B2, S2, D2, L2 = 8, 8, 256, 4
    k_feat, k_w1, k_b1, k_w2, k_b2 = jax.random.split(jax.random.PRNGKey(0), 5)
    features2 = jax.random.normal(k_feat, (B2, S2, D2), dtype=jnp.float32)
    dense_w2 = jax.random.normal(k_w1, (D2, D2), dtype=jnp.float32) * 0.05
    dense_b2 = jax.random.normal(k_b1, (D2,), dtype=jnp.float32) * 0.01
    out_w2 = jax.random.normal(k_w2, (L2, D2), dtype=jnp.float32) * 0.05
    out_b2 = jax.random.normal(k_b2, (L2,), dtype=jnp.float32) * 0.01

    params2 = prepare_classification_head_params(dense_w2, dense_b2, out_w2, out_b2)
    logits2 = jax.block_until_ready(
        classification_head_apply(features2, params2, hidden_tile=128))

    x2 = features2[:, 0, :]
    h2 = jnp.tanh(jnp.dot(x2, dense_w2.T, precision=lax.Precision.HIGHEST) + dense_b2)
    ref2 = jnp.dot(h2, out_w2.T, precision=lax.Precision.HIGHEST) + out_b2
    assert logits2.shape == (B2, L2)
    assert jnp.allclose(logits2, ref2, atol=1e-3, rtol=1e-3), \
        float(jnp.max(jnp.abs(logits2 - ref2)))

    print("KERNEL_OK")
</pallas_src>

<mosaic_0001>
module attributes {stable_mosaic.version = 11 : i64} {
  func.func @_cls_head_kernel(%arg0: i32, %arg1: memref<2x32xf32, #tpu.memory_space<vmem>>, %arg2: memref<32x128xf32, #tpu.memory_space<vmem>>, %arg3: memref<1x128xf32, #tpu.memory_space<vmem>>, %arg4: memref<128x128xf32, #tpu.memory_space<vmem>>, %arg5: memref<1x128xf32, #tpu.memory_space<vmem>>, %arg6: memref<2x128xf32, #tpu.memory_space<vmem>>) attributes {dimension_semantics = [#tpu.dimension_semantics<parallel>], iteration_bounds = array<i64: 1>, scalar_prefetch = 0 : i64, scratch_operands = 0 : i64, tpu.core_type = #tpu.core_type<tc>, window_params = [{transform_indices = @transform_0, window_bounds = array<i64: 2, 32>}, {pipeline_mode = #tpu.pipeline_mode<synchronous>, transform_indices = @transform_1, window_bounds = array<i64: 32, 128>}, {pipeline_mode = #tpu.pipeline_mode<synchronous>, transform_indices = @transform_2, window_bounds = array<i64: 1, 128>}, {pipeline_mode = #tpu.pipeline_mode<synchronous>, transform_indices = @transform_3, window_bounds = array<i64: 128, 128>}, {pipeline_mode = #tpu.pipeline_mode<synchronous>, transform_indices = @transform_4, window_bounds = array<i64: 1, 128>}, {transform_indices = @transform_5, window_bounds = array<i64: 2, 128>}]} {
    %c0 = arith.constant 0 : index
    %c0_0 = arith.constant 0 : index
    %0 = vector.load %arg1[%c0, %c0_0] : memref<2x32xf32, #tpu.memory_space<vmem>>, vector<2x32xf32>
    %c0_1 = arith.constant 0 : index
    %c0_2 = arith.constant 0 : index
    %1 = vector.load %arg2[%c0_1, %c0_2] : memref<32x128xf32, #tpu.memory_space<vmem>>, vector<32x128xf32>
    %cst = arith.constant dense<0.000000e+00> : vector<2x128xf32>
    %2 = tpu.matmul %0, %1, %cst {dimension_numbers = #tpu.dot_dimension_numbers<[1], [0], [0], [1], [0, 0, 1, 1], [], []>} : vector<2x32xf32>, vector<32x128xf32>, vector<2x128xf32> -> vector<2x128xf32>
    %c0_3 = arith.constant 0 : index
    %c0_4 = arith.constant 0 : index
    %3 = vector.load %arg3[%c0_3, %c0_4] : memref<1x128xf32, #tpu.memory_space<vmem>>, vector<1x128xf32>
    %4 = vector.broadcast %3 : vector<1x128xf32> to vector<2x128xf32>
    %5 = arith.addf %2, %4 : vector<2x128xf32>
    %6 = math.tanh %5 : vector<2x128xf32>
    %c0_5 = arith.constant 0 : index
    %c0_6 = arith.constant 0 : index
    %7 = vector.load %arg4[%c0_5, %c0_6] : memref<128x128xf32, #tpu.memory_space<vmem>>, vector<128x128xf32>
    %cst_7 = arith.constant dense<0.000000e+00> : vector<2x128xf32>
    %8 = tpu.matmul %6, %7, %cst_7 {dimension_numbers = #tpu.dot_dimension_numbers<[1], [0], [0], [1], [0, 0, 1, 1], [], []>} : vector<2x128xf32>, vector<128x128xf32>, vector<2x128xf32> -> vector<2x128xf32>
    %c0_8 = arith.constant 0 : index
    %c0_9 = arith.constant 0 : index
    %9 = vector.load %arg5[%c0_8, %c0_9] : memref<1x128xf32, #tpu.memory_space<vmem>>, vector<1x128xf32>
    %10 = vector.broadcast %9 : vector<1x128xf32> to vector<2x128xf32>
    %11 = arith.addf %8, %10 : vector<2x128xf32>
    %c0_10 = arith.constant 0 : index
    %c0_11 = arith.constant 0 : index
    %12 = vector.load %arg6[%c0_10, %c0_11] : memref<2x128xf32, #tpu.memory_space<vmem>>, vector<2x128xf32>
    tpu.vector_store %arg6[%c0_10, %c0_11], %11 {strides = array<i32>} : memref<2x128xf32, #tpu.memory_space<vmem>>, vector<2x128xf32>,
    return
  }
  func.func @transform_0(%arg0: i32) -> (i32, i32) {
    %c0_i32 = arith.constant 0 : i32
    %c0_i32_0 = arith.constant 0 : i32
    return %arg0, %c0_i32 : i32, i32
  }
  func.func @transform_1(%arg0: i32) -> (i32, i32) {
    %c0_i32 = arith.constant 0 : i32
    %c0_i32_0 = arith.constant 0 : i32
    %c0_i32_1 = arith.constant 0 : i32
    return %c0_i32, %c0_i32_0 : i32, i32
  }
  func.func @transform_2(%arg0: i32) -> (i32, i32) {
    %c0_i32 = arith.constant 0 : i32
    %c0_i32_0 = arith.constant 0 : i32
    %c0_i32_1 = arith.constant 0 : i32
    return %c0_i32, %c0_i32_0 : i32, i32
  }
  func.func @transform_3(%arg0: i32) -> (i32, i32) {
    %c0_i32 = arith.constant 0 : i32
    %c0_i32_0 = arith.constant 0 : i32
    %c0_i32_1 = arith.constant 0 : i32
    return %c0_i32, %c0_i32_0 : i32, i32
  }
  func.func @transform_4(%arg0: i32) -> (i32, i32) {
    %c0_i32 = arith.constant 0 : i32
    %c0_i32_0 = arith.constant 0 : i32
    %c0_i32_1 = arith.constant 0 : i32
    return %c0_i32, %c0_i32_0 : i32, i32
  }
  func.func @transform_5(%arg0: i32) -> (i32, i32) {
    %c0_i32 = arith.constant 0 : i32
    %c0_i32_0 = arith.constant 0 : i32
    return %arg0, %c0_i32 : i32, i32
  }
}

</mosaic_0001>

<bundles_post_ra>
// kernel: tpu_custom_call.1
= control target key start
LH: loop header
LB: loop body
LE: loop exit
PB: predicated region body
PF: predicated region fallthrough
CT: control target
= control target key end

     0   :  { %10 = vsyncpa [#allocation3], 0  ;;  %s502_s0 = inlined_call_operand.hbm [shape: f32[2,32], index: 0, kind: input, shape index: {}]   ;;  %s503_s1 = inlined_call_operand.hbm [shape: f32[32,128], index: 1, kind: input, shape index: {}]   ;;  %s504_s2 = inlined_call_operand.vmem [shape: f32[1,128], index: 2, kind: input, shape index: {}]   ;;  %s505_s3 = inlined_call_operand.hbm [shape: f32[128,128], index: 3, kind: input, shape index: {}]   ;;  %s506_s4 = inlined_call_operand.vmem [shape: f32[1,128], index: 4, kind: input, shape index: {}]   ;;  %s507_s5 = inlined_call_operand.hbm [shape: f32[2,128], index: 5, kind: output, shape index: {}]  }
   0x1   :  { %11 = vsyncpa [#allocation6], 0 }
   0x2   :  { %12 = vsyncpa [#allocation4], 0  ;;  %s424_s18 = smov [#allocation5]  }
   0x3   :  { %s28_s19 = sshll.u32 %s424_s18, 4  ;;  %s29_s19 = int_to_ptr.vmem [resolvable:$true] %s28_s19 }
   0x4   :  { %s346_s20 = scalar_lea.vmem %s29_s19, 512  ;;  %p351_p1 = scmp.lt.s32.totalorder %s29_s19, %s29_s19 }
   0x5   :  { %p347_p0 = scmp.ne.s32.totalorder %s29_s19, %s346_s20  ;;  %p352_p2 = scmp.lt.s32.totalorder %s346_s20, %s346_s20 }
   0x7   :  { %p353_p3 = por %p352_p2, %p351_p1 }
   0x9   :  { %p354_p4 = pnand %p353_p3, %p347_p0 }
   0xb   :  { %357 = shalt.err (!%p354_p4)
}
   0xc   :  { %s425_s21 = smov 128   ;;  %s426_s22 = smov 8  }
   0xd   :  { %34 = dma.hbm_to_vmem [thread:$0]  %s503_s1, 512, %s29_s19, [#allocation6], %s425_s21, %s425_s21, %s426_s22  }
   0xe   :  { %s427_s25 = smov [#allocation2]   ;;  %s428_s27 = smov [#allocation7]  }
   0xf   :  { %s19_s26 = sshll.u32 %s427_s25, 4  ;;  %s42_s28 = sshll.u32 %s428_s27, 4  ;;  %s20_s26 = int_to_ptr.vmem [resolvable:$true] %s19_s26  ;;  %s43_s28 = int_to_ptr.vmem [resolvable:$true] %s42_s28 }
  0x10   :  { %s366_s29 = scalar_lea.vmem %s20_s26, 32  ;;  %p371_p6 = scmp.lt.s32.totalorder %s20_s26, %s20_s26 }
  0x11   :  { %p367_p5 = scmp.ne.s32.totalorder %s20_s26, %s366_s29  ;;  %p372_p7 = scmp.lt.s32.totalorder %s366_s29, %s366_s29 }
  0x13   :  { %p373_p8 = por %p372_p7, %p371_p6 }
  0x15   :  { %p374_p9 = pnand %p373_p8, %p367_p5 }
  0x17   :  { %377 = shalt.err (!%p374_p9)
}
  0x18   :  { %22 = dma.hbm_to_vmem [thread:$0]  %s502_s0, 32, %s20_s26, [#allocation3]  }
  0x19   :  { %s386_s7 = scalar_lea.vmem %s43_s28, 2048  ;;  %p391_p11 = scmp.lt.s32.totalorder %s43_s28, %s43_s28 }
  0x1a   :  { %p387_p10 = scmp.ne.s32.totalorder %s43_s28, %s386_s7  ;;  %p392_p12 = scmp.lt.s32.totalorder %s386_s7, %s386_s7 }
  0x1c   :  { %p393_p13 = por %p392_p12, %p391_p11 }
  0x1e   :  { %p394_p0 = pnand %p393_p13, %p387_p10 }
  0x20   :  { %397 = shalt.err (!%p394_p0)
}
  0x21   :  { %48 = dma.hbm_to_vmem [thread:$0]  %s505_s3, 2048, %s43_s28, [#allocation6], %s425_s21, %s425_s21, %s426_s22  }
  0x22   :  { %418 = dma.done.wait [#allocation3], 32  }
  0x23   :  { %419 = vsyncadd [#allocation3], 4294967264 }
  0x24   :  { %420 = dma.done.wait [#allocation6], 2560  }
  0x25   :  { %421 = vsyncadd [#allocation6], 4294964736  ;;  %v429_v0 = vmov 0.0   ;;  %vm430_vm0 = vmmov 0   ;;  %v64_v1 = vld [vmem:[#allocation5 + $0x18] sm:$0xff]  ;;  %v63_v2 = vld [vmem:[#allocation5 + $0x10] sm:$0xff] }
  0x26   :  { %282 = vmatprep.subr.mxu0 %v429_v0  ;;  %290 = vmatprep.mubr.msk.f32.mxu0 %vm430_vm0, %v429_v0  ;;  %v162_v3 = vld [vmem:[#allocation7 + $0x78] sm:$0xff]  ;;  %v62_v4 = vld [vmem:[#allocation5 + $0x8] sm:$0xff]  ;;  %v161_v5 = vld [vmem:[#allocation7 + $0x70] sm:$0xff]  ;;  %vm72_vm1 = vcmask 261120   ;;  %s431_s11 = smov [#allocation8]  }
  0x27   :  { %293 = vmatprep.subr.mxu1 %v429_v0  ;;  %325 = vmatprep.mubr.msk.f32.mxu1 %vm430_vm0, %v429_v0  ;;  %v160_v6 = vld [vmem:[#allocation7 + $0x68] sm:$0xff]  ;;  %v61_v7 = vld [vmem:[#allocation5] sm:$0xff]  ;;  %v60_v8 = vld [vmem:[#allocation2] sm:$0x3]  ;;  %s247_s12 = sshll.u32 %s431_s11, 4  ;;  %s248_s12 = int_to_ptr.vmem [resolvable:$true] %s247_s12 }
  0x28   :  { %283 = vmatpush3.msra.mxu0 %v64_v1  ;;  %294 = vmatpush3.msra.mxu1 %v162_v3  ;;  %v159_v9 = vld [vmem:[#allocation7 + $0x60] sm:$0xff]  ;;  %v158_v10 = vld [vmem:[#allocation7 + $0x58] sm:$0xff]  ;;  %v157_v11 = vld [vmem:[#allocation7 + $0x50] sm:$0xff]  ;;  %s398_s13 = scalar_lea.vmem %s248_s12, 32  ;;  %p403_p2 = scmp.lt.s32.totalorder %s248_s12, %s248_s12 }
  0x29   :  { %284 = vmatprep.subr.mxu0 %v429_v0  ;;  %295 = vmatprep.subr.mxu1 %v429_v0  ;;  %v156_v12 = vld [vmem:[#allocation7 + $0x48] sm:$0xff]  ;;  %v155_v13 = vld [vmem:[#allocation7 + $0x40] sm:$0xff]  ;;  %v154_v14 = vld [vmem:[#allocation7 + $0x38] sm:$0xff]  ;;  %p399_p1 = scmp.ne.s32.totalorder %s248_s12, %s398_s13  ;;  %p404_p3 = scmp.lt.s32.totalorder %s398_s13, %s398_s13 }
  0x2a   :  { %285 = vmatpush3.msra.mxu0 %v63_v2  ;;  %296 = vmatpush3.msra.mxu1 %v161_v5  ;;  %v153_v15 = vld [vmem:[#allocation7 + $0x30] sm:$0xff]  ;;  %v152_v16 = vld [vmem:[#allocation7 + $0x28] sm:$0xff]  ;;  %v151_v17 = vld [vmem:[#allocation7 + $0x20] sm:$0xff] }
  0x2b   :  { %286 = vmatprep.subr.mxu0 %v429_v0  ;;  %297 = vmatprep.subr.mxu1 %v429_v0  ;;  %v150_v18 = vld [vmem:[#allocation7 + $0x18] sm:$0xff]  ;;  %v149_v19 = vld [vmem:[#allocation7 + $0x10] sm:$0xff]  ;;  %v148_v20 = vld [vmem:[#allocation7 + $0x8] sm:$0xff]  ;;  %p405_p4 = por %p404_p3, %p403_p2 }
  0x2c   :  { %287 = vmatpush3.msra.mxu0 %v62_v4  ;;  %298 = vmatpush3.msra.mxu1 %v160_v6  ;;  %v147_v21 = vld [vmem:[#allocation7] sm:$0xff]  ;;  %v257_v22 = vld [vmem:[%s504_s2] ss:$0 sm:$0xff] }
  0x2d   :  { %288 = vmatprep.subr.mxu0 %v429_v0  ;;  %299 = vmatprep.subr.mxu1 %v429_v0  ;;  %v259_v27 = vld [vmem:[%s506_s4] ss:$0 sm:$0xff]  ;;  %p406_p5 = pnand %p405_p4, %p399_p1 }
  0x2e   :  { %289 = vmatpush3.msra.mxu0 %v61_v7  ;;  %300 = vmatpush3.msra.mxu1 %v159_v9 }
  0x2f   :  { %291 = vmatmul.mubr.msk.f32.vlgmr.msra.gmra.mxu0 %vm72_vm1, %v60_v8  ;;  %301 = vmatprep.subr.mxu1 %v429_v0 }
  0x30   :  { %302 = vmatpush3.msra.mxu1 %v158_v10 }
  0x31   :  { %303 = vmatprep.subr.mxu1 %v429_v0 }
  0x32   :  { %304 = vmatpush3.msra.mxu1 %v157_v11 }
  0x33   :  { %305 = vmatprep.subr.mxu1 %v429_v0 }
  0x34   :  { %306 = vmatpush3.msra.mxu1 %v156_v12 }
  0x35   :  { %307 = vmatprep.subr.mxu1 %v429_v0 }
  0x36   :  { %308 = vmatpush3.msra.mxu1 %v155_v13 }
  0x37   :  { %309 = vmatprep.subr.mxu1 %v429_v0 }
  0x38   :  { %310 = vmatpush3.msra.mxu1 %v154_v14 }
  0x39   :  { %311 = vmatprep.subr.mxu1 %v429_v0 }
  0x3a   :  { %312 = vmatpush3.msra.mxu1 %v153_v15 }
  0x3b   :  { %313 = vmatprep.subr.mxu1 %v429_v0 }
  0x3c   :  { %314 = vmatpush3.msra.mxu1 %v152_v16 }
  0x3d   :  { %315 = vmatprep.subr.mxu1 %v429_v0 }
  0x3e   :  { %316 = vmatpush3.msra.mxu1 %v151_v17 }
  0x3f   :  { %317 = vmatprep.subr.mxu1 %v429_v0 }
  0x40   :  { %318 = vmatpush3.msra.mxu1 %v150_v18 }
  0x41   :  { %319 = vmatprep.subr.mxu1 %v429_v0 }
  0x42   :  { %320 = vmatpush3.msra.mxu1 %v149_v19 }
  0x43   :  { %321 = vmatprep.subr.mxu1 %v429_v0 }
  0x44   :  { %322 = vmatpush3.msra.mxu1 %v148_v20 }
  0x45   :  { %323 = vmatprep.subr.mxu1 %v429_v0 }
  0x46   :  { %324 = vmatpush3.msra.mxu1 %v147_v21 }
  0xef   :  { %v142_v23 = vpop.f32.mrf.mxu0 }
  0xf0   :  { %v143_v24 = vadd.f32 %v257_v22, %v142_v23 }
  0xf1   :  { %v292_v25 = vpop.f32.mrf.mxu0 }
  0xf2   :  { %336 = vtanh.f32 %v143_v24 }
  0xff   :  { %v337_v26 = vpop.eup %336 }
 0x100   :  { %326 = vmatmul.mubr.f32.vlgmr.msra.gmra.mxu1 %v337_v26 }
 0x1c0   :  { %v236_v28 = vpop.f32.mrf.mxu1 }
 0x1c1   :  { %v237_v29 = vadd.f32 %v259_v27, %v236_v28 }
 0x1c2   :  { %v327_v30 = vpop.f32.mrf.mxu1 }
 0x1c3   :  { %240 = vst [vmem:[#allocation8] sm:$0x3] %v237_v29 }
 0x1c4   :  { %409 = shalt.err (!%p406_p5)
}
 0x1c5   :  { %250 = dma.vmem_to_hbm [thread:$0]  %s248_s12, 32, %s507_s5, [#allocation4]  }
 0x1c6   :  { %422 = dma.done.wait [#allocation4], 32  }
 0x1c7   :  { %423 = vsyncadd [#allocation4], 4294967264 }
 0x1c8   :  { %254 = vsyncpa [#allocation3], 1 }
 0x1c9   :  { %255 = vsyncpa [#allocation6], 1 }
 0x1ca   :  { %256 = vsyncpa [#allocation4], 1 }

</bundles_post_ra>
